<compile_context>
chip_gen: v6e
topology: v6e:2x2x1
jax: 0.10.0
libtpu: 0.0.40
codegen_flags: <defaults>
</compile_context>

<pallas_src>
import functools
import math

import jax
import jax.numpy as jnp
import numpy as np
from jax.experimental import pallas as pl
from jax.experimental.pallas import tpu as pltpu

OUT_PAD = 8             # sublane-padded output head (real output dim = 3)
TARGET_TILE_ROWS = 512  # ~512-row tiles keep the pipeline near HBM roofline


def tem_kernel(x_ref, w1_ref, b1_ref, w2_ref, b2_ref, w3t_ref, b3t_ref, o_ref,
               *, seq_len):
    """x_ref: (TM, Cin), TM a whole number of length-seq_len sequences."""
    tm = x_ref.shape[0]

    # Sequence-boundary masks: built ONCE per tile as (TM, 1), reused by both
    # k=3 conv layers via broadcasting.
    pos = jax.lax.broadcasted_iota(jnp.int32, (tm, 1), 0) % seq_len
    first_row = pos == 0               # row is t == 0 of its sequence
    last_row = pos == seq_len - 1      # row is t == T-1 of its sequence

    def conv3(h, w_ref, b):
        # h: (TM, C); w_ref: (3, C, Cout) stacked as [tap t-1; tap t; tap t+1].
        # Shifted copies via XLU roll; halo rows zeroed at sequence boundaries.
        prev = jnp.where(first_row, 0.0, pltpu.roll(h, 1, axis=0))       # x[t-1]
        nxt = jnp.where(last_row, 0.0, pltpu.roll(h, tm - 1, axis=0))    # x[t+1]
        # Three per-tap MXU dots accumulated in f32 (no lane-axis concat).
        acc = jnp.dot(prev, w_ref[0], preferred_element_type=jnp.float32)
        acc += jnp.dot(h, w_ref[1], preferred_element_type=jnp.float32)
        acc += jnp.dot(nxt, w_ref[2], preferred_element_type=jnp.float32)
        return acc + b

    x = x_ref[...]                                              # (TM, Cin)
    h1 = jnp.maximum(conv3(x, w1_ref, b1_ref[...]), 0.0)        # (TM, H)
    h2 = jnp.maximum(conv3(h1, w2_ref, b2_ref[...]), 0.0)       # (TM, H)

    # Final 1x1 conv, transposed/narrow head: (OUT_PAD, TM) = w3t @ h2^T.
    # The 0.01 logit scale is folded into w3t/b3t; padded rows are zero weights.
    logits_t = jax.lax.dot_general(
        w3t_ref[...], h2,
        dimension_numbers=(((1,), (1,)), ((), ())),
        preferred_element_type=jnp.float32)                     # (OUT_PAD, TM)
    o_ref[...] = jax.nn.sigmoid(logits_t + b3t_ref[...])


def _tile_rows(m, seq_len):
    """Rows per tile: whole sequences, lane-aligned (mult. of 128) when tiled."""
    if m <= TARGET_TILE_ROWS:
        return m                                   # single tile (== full dim)
    base = (seq_len * 128) // math.gcd(seq_len, 128)   # lcm(T, 128)
    if base >= m:
        return m
    return base * max(1, TARGET_TILE_ROWS // base)


def tem_forward(x_ncl, kernel_params):
    """x_ncl: (B, feat_dim, T) float32 -> (B, 3, T) float32 (PyTorch semantics)."""
    w1, b1, w2, b2, w3t, b3t = kernel_params
    B, Cin, T = x_ncl.shape
    H = b1.shape[1]
    M = B * T

    tm = _tile_rows(M, T)
    m_pad = pl.cdiv(M, tm) * tm
    grid = (m_pad // tm,)

    # NCL -> channels-last, flatten batch & time; zero-pad to whole tiles
    # (padding = whole phantom sequences, cannot leak into real rows).
    x_flat = jnp.transpose(x_ncl, (0, 2, 1)).reshape(M, Cin)
    if m_pad != M:
        x_flat = jnp.pad(x_flat, ((0, m_pad - M), (0, 0)))

    out_t = pl.pallas_call(
        functools.partial(tem_kernel, seq_len=T),
        out_shape=jax.ShapeDtypeStruct((OUT_PAD, m_pad), jnp.float32),
        grid_spec=pltpu.PrefetchScalarGridSpec(
            num_scalar_prefetch=0,
            grid=grid,
            in_specs=[
                pl.BlockSpec((tm, Cin), lambda i: (i, 0)),       # x tile
                pl.BlockSpec((3, Cin, H), lambda i: (0, 0, 0)),  # w1 (VMEM-resident)
                pl.BlockSpec((1, H), lambda i: (0, 0)),          # b1
                pl.BlockSpec((3, H, H), lambda i: (0, 0, 0)),    # w2
                pl.BlockSpec((1, H), lambda i: (0, 0)),          # b2
                pl.BlockSpec((OUT_PAD, H), lambda i: (0, 0)),    # w3 (scaled, padded, T)
                pl.BlockSpec((OUT_PAD, 1), lambda i: (0, 0)),    # b3 (scaled, padded, T)
            ],
            out_specs=pl.BlockSpec((OUT_PAD, tm), lambda i: (0, i)),
        ),
        compiler_params=pltpu.CompilerParams(
            dimension_semantics=("parallel",),   # shard tiles across TCs (v7x)
            vmem_limit_bytes=32 * 1024 * 1024),
    )(x_flat, w1, b1, w2, b2, w3t, b3t)

    out = out_t[:3, :M].reshape(3, B, T)         # drop padded rows/cols (tiny)
    return jnp.transpose(out, (1, 0, 2))         # (B, 3, T)


def init_params(key, feat_dim, hidden, out_dim=3):
    """Deterministic synthetic parameters (kernel layout: (tap, in, out))."""
    k1, k2, k3, k4, k5, k6 = jax.random.split(key, 6)
    w1 = jax.random.normal(k1, (3, feat_dim, hidden), jnp.float32) * 0.1
    b1 = jax.random.normal(k2, (1, hidden), jnp.float32) * 0.1
    w2 = jax.random.normal(k3, (3, hidden, hidden), jnp.float32) * 0.1
    b2 = jax.random.normal(k4, (1, hidden), jnp.float32) * 0.1
    w3 = jax.random.normal(k5, (hidden, out_dim), jnp.float32) * 0.1
    b3 = jax.random.normal(k6, (1, out_dim), jnp.float32) * 0.1
    return (w1, b1, w2, b2, w3, b3)


def prepare_params(params):
    """One-time prep: transpose + pad the final projection to OUT_PAD sublanes
    and fold the 0.01 logit scale into w3/b3. Conv weights stay (tap, in, out)."""
    w1, b1, w2, b2, w3, b3 = params
    h = w1.shape[2]
    out_dim = w3.shape[1]
    w3t = jnp.zeros((OUT_PAD, h), jnp.float32).at[:out_dim, :].set(0.01 * w3.T)
    b3t = jnp.zeros((OUT_PAD, 1), jnp.float32).at[:out_dim, 0].set(0.01 * b3[0])
    return (w1, b1, w2, b2, w3t, b3t)


def tem_reference(x_ncl, params):
    """Pure-JAX reference using lax conv (PyTorch NCL / OIH weight layout)."""
    w1, b1, w2, b2, w3, b3 = params

    def conv1d(x, w_kio, b, pad):
        w_oik = jnp.transpose(w_kio, (2, 1, 0))  # (out, in, k)
        y = jax.lax.conv_general_dilated(
            x, w_oik, window_strides=(1,), padding=[(pad, pad)],
            dimension_numbers=("NCH", "OIH", "NCH"),
        )
        return y + b.reshape(1, -1, 1)

    h1 = jax.nn.relu(conv1d(x_ncl, w1, b1, pad=1))
    h2 = jax.nn.relu(conv1d(h1, w2, b2, pad=1))
    y = conv1d(h2, w3[None], b3, pad=0)
    return jax.nn.sigmoid(0.01 * y)


if __name__ == "__main__":
    def run_and_check(B, FEAT, T, HIDDEN, seed):
        key = jax.random.PRNGKey(seed)
        k_x, k_p = jax.random.split(key)
        x = jax.random.normal(k_x, (B, FEAT, T), jnp.float32)
        params = init_params(k_p, FEAT, HIDDEN)
        kparams = prepare_params(params)      # one-time parameter prep
        out = jax.jit(tem_forward)(x, kparams)
        out = jax.block_until_ready(out)
        ref = tem_reference(x, params)
        np.testing.assert_allclose(np.asarray(out), np.asarray(ref),
                                   rtol=1e-5, atol=1e-5)
        assert out.shape == (B, 3, T)

    # Toy config consistent with the module defaults (single-tile path).
    run_and_check(B=2, FEAT=16, T=16, HIDDEN=32, seed=0)
    # Larger config exercising the tiled-M + zero-padded path (grid > 1).
    run_and_check(B=9, FEAT=48, T=128, HIDDEN=64, seed=1)

    print("KERNEL_OK")
</pallas_src>

<mosaic_0001>
module attributes {stable_mosaic.version = 11 : i64} {
  func.func @tem_kernel(%arg0: i32, %arg1: memref<32x16xf32, #tpu.memory_space<vmem>>, %arg2: memref<3x16x32xf32, #tpu.memory_space<vmem>>, %arg3: memref<1x32xf32, #tpu.memory_space<vmem>>, %arg4: memref<3x32x32xf32, #tpu.memory_space<vmem>>, %arg5: memref<1x32xf32, #tpu.memory_space<vmem>>, %arg6: memref<8x32xf32, #tpu.memory_space<vmem>>, %arg7: memref<8x1xf32, #tpu.memory_space<vmem>>, %arg8: memref<8x32xf32, #tpu.memory_space<vmem>>) attributes {dimension_semantics = [#tpu.dimension_semantics<parallel>], iteration_bounds = array<i64: 1>, scalar_prefetch = 0 : i64, scratch_operands = 0 : i64, tpu.core_type = #tpu.core_type<tc>, window_params = [{transform_indices = @transform_0, window_bounds = array<i64: 32, 16>}, {pipeline_mode = #tpu.pipeline_mode<synchronous>, transform_indices = @transform_1, window_bounds = array<i64: 3, 16, 32>}, {pipeline_mode = #tpu.pipeline_mode<synchronous>, transform_indices = @transform_2, window_bounds = array<i64: 1, 32>}, {pipeline_mode = #tpu.pipeline_mode<synchronous>, transform_indices = @transform_3, window_bounds = array<i64: 3, 32, 32>}, {pipeline_mode = #tpu.pipeline_mode<synchronous>, transform_indices = @transform_4, window_bounds = array<i64: 1, 32>}, {pipeline_mode = #tpu.pipeline_mode<synchronous>, transform_indices = @transform_5, window_bounds = array<i64: 8, 32>}, {pipeline_mode = #tpu.pipeline_mode<synchronous>, transform_indices = @transform_6, window_bounds = array<i64: 8, 1>}, {transform_indices = @transform_7, window_bounds = array<i64: 8, 32>}]} {
    %0 = tpu.iota {dimensions = array<i32: 0>} : vector<32x1xi32>
    %c16_i32 = arith.constant 16 : i32
    %c0_i32 = arith.constant 0 : i32
    %1 = arith.cmpi eq, %c16_i32, %c0_i32 : i32
    %c1_i32 = arith.constant 1 : i32
    %2 = arith.select %1, %c1_i32, %c16_i32 : i32
    %3 = vector.broadcast %2 : i32 to vector<32x1xi32>
    %4 = arith.remsi %0, %3 : vector<32x1xi32>
    %c0_i32_0 = arith.constant 0 : i32
    %5 = vector.broadcast %c0_i32_0 : i32 to vector<32x1xi32>
    %6 = arith.cmpi ne, %4, %5 : vector<32x1xi32>
    %c0_i32_1 = arith.constant 0 : i32
    %7 = vector.broadcast %c0_i32_1 : i32 to vector<32x1xi32>
    %8 = arith.cmpi slt, %4, %7 : vector<32x1xi32>
    %c0_i32_2 = arith.constant 0 : i32
    %9 = arith.cmpi slt, %2, %c0_i32_2 : i32
    %10 = vector.broadcast %9 : i1 to vector<32x1xi1>
    %11 = vector.broadcast %10 : vector<32x1xi1> to vector<32x1xi1>
    %12 = arith.xori %8, %11 : vector<32x1xi1>
    %13 = arith.andi %12, %6 : vector<32x1xi1>
    %14 = vector.broadcast %2 : i32 to vector<32x1xi32>
    %15 = arith.addi %4, %14 : vector<32x1xi32>
    %16 = arith.select %13, %15, %4 : vector<32x1xi1>, vector<32x1xi32>
    %c0_i32_3 = arith.constant 0 : i32
    %17 = vector.broadcast %c0_i32_3 : i32 to vector<32x1xi32>
    %18 = arith.cmpi eq, %16, %17 : vector<32x1xi32>
    %c15_i32 = arith.constant 15 : i32
    %19 = vector.broadcast %c15_i32 : i32 to vector<32x1xi32>
    %20 = arith.cmpi eq, %16, %19 : vector<32x1xi32>
    %c0 = arith.constant 0 : index
    %c0_4 = arith.constant 0 : index
    %21 = vector.load %arg1[%c0, %c0_4] : memref<32x16xf32, #tpu.memory_space<vmem>>, vector<32x16xf32>
    %c0_5 = arith.constant 0 : index
    %c0_6 = arith.constant 0 : index
    %22 = vector.load %arg3[%c0_5, %c0_6] : memref<1x32xf32, #tpu.memory_space<vmem>>, vector<1x32xf32>
    %c1_i32_7 = arith.constant 1 : i32
    %23 = tpu.dynamic_rotate %21 by %c1_i32_7 dim 0 : vector<32x16xf32>, i32 -> vector<32x16xf32>
    %cst = arith.constant 0.000000e+00 : f32
    %24 = vector.shape_cast %18 : vector<32x1xi1> to vector<32x1xi1>
    %25 = vector.broadcast %24 : vector<32x1xi1> to vector<32x16xi1>
    %26 = vector.broadcast %cst : f32 to vector<32x16xf32>
    %27 = arith.select %25, %26, %23 : vector<32x16xi1>, vector<32x16xf32>
    %c31_i32 = arith.constant 31 : i32
    %28 = tpu.dynamic_rotate %21 by %c31_i32 dim 0 : vector<32x16xf32>, i32 -> vector<32x16xf32>
    %cst_8 = arith.constant 0.000000e+00 : f32
    %29 = vector.shape_cast %20 : vector<32x1xi1> to vector<32x1xi1>
    %30 = vector.broadcast %29 : vector<32x1xi1> to vector<32x16xi1>
    %31 = vector.broadcast %cst_8 : f32 to vector<32x16xf32>
    %32 = arith.select %30, %31, %28 : vector<32x16xi1>, vector<32x16xf32>
    %c0_9 = arith.constant 0 : index
    %c0_10 = arith.constant 0 : index
    %c0_11 = arith.constant 0 : index
    %33 = vector.load %arg2[%c0_9, %c0_10, %c0_11] : memref<3x16x32xf32, #tpu.memory_space<vmem>>, vector<1x16x32xf32>
    %34 = vector.shape_cast %33 : vector<1x16x32xf32> to vector<16x32xf32>
    %cst_12 = arith.constant dense<0.000000e+00> : vector<32x32xf32>
    %35 = tpu.matmul %27, %34, %cst_12 {dimension_numbers = #tpu.dot_dimension_numbers<[1], [0], [0], [1], [0, 0, 1, 1], [], []>} : vector<32x16xf32>, vector<16x32xf32>, vector<32x32xf32> -> vector<32x32xf32>
    %c1 = arith.constant 1 : index
    %c0_13 = arith.constant 0 : index
    %c0_14 = arith.constant 0 : index
    %36 = vector.load %arg2[%c1, %c0_13, %c0_14] : memref<3x16x32xf32, #tpu.memory_space<vmem>>, vector<1x16x32xf32>
    %37 = vector.shape_cast %36 : vector<1x16x32xf32> to vector<16x32xf32>
    %cst_15 = arith.constant dense<0.000000e+00> : vector<32x32xf32>
    %38 = tpu.matmul %21, %37, %cst_15 {dimension_numbers = #tpu.dot_dimension_numbers<[1], [0], [0], [1], [0, 0, 1, 1], [], []>} : vector<32x16xf32>, vector<16x32xf32>, vector<32x32xf32> -> vector<32x32xf32>
    %39 = arith.addf %35, %38 : vector<32x32xf32>
    %c2 = arith.constant 2 : index
    %c0_16 = arith.constant 0 : index
    %c0_17 = arith.constant 0 : index
    %40 = vector.load %arg2[%c2, %c0_16, %c0_17] : memref<3x16x32xf32, #tpu.memory_space<vmem>>, vector<1x16x32xf32>
    %41 = vector.shape_cast %40 : vector<1x16x32xf32> to vector<16x32xf32>
    %cst_18 = arith.constant dense<0.000000e+00> : vector<32x32xf32>
    %42 = tpu.matmul %32, %41, %cst_18 {dimension_numbers = #tpu.dot_dimension_numbers<[1], [0], [0], [1], [0, 0, 1, 1], [], []>} : vector<32x16xf32>, vector<16x32xf32>, vector<32x32xf32> -> vector<32x32xf32>
    %43 = arith.addf %39, %42 : vector<32x32xf32>
    %44 = vector.broadcast %22 : vector<1x32xf32> to vector<32x32xf32>
    %45 = arith.addf %43, %44 : vector<32x32xf32>
    %cst_19 = arith.constant 0.000000e+00 : f32
    %46 = vector.broadcast %cst_19 : f32 to vector<32x32xf32>
    %47 = arith.maximumf %45, %46 : vector<32x32xf32>
    %c0_20 = arith.constant 0 : index
    %c0_21 = arith.constant 0 : index
    %48 = vector.load %arg5[%c0_20, %c0_21] : memref<1x32xf32, #tpu.memory_space<vmem>>, vector<1x32xf32>
    %c1_i32_22 = arith.constant 1 : i32
    %49 = tpu.dynamic_rotate %47 by %c1_i32_22 dim 0 : vector<32x32xf32>, i32 -> vector<32x32xf32>
    %cst_23 = arith.constant 0.000000e+00 : f32
    %50 = vector.shape_cast %18 : vector<32x1xi1> to vector<32x1xi1>
    %51 = vector.broadcast %50 : vector<32x1xi1> to vector<32x32xi1>
    %52 = vector.broadcast %cst_23 : f32 to vector<32x32xf32>
    %53 = arith.select %51, %52, %49 : vector<32x32xi1>, vector<32x32xf32>
    %c31_i32_24 = arith.constant 31 : i32
    %54 = tpu.dynamic_rotate %47 by %c31_i32_24 dim 0 : vector<32x32xf32>, i32 -> vector<32x32xf32>
    %cst_25 = arith.constant 0.000000e+00 : f32
    %55 = vector.shape_cast %20 : vector<32x1xi1> to vector<32x1xi1>
    %56 = vector.broadcast %55 : vector<32x1xi1> to vector<32x32xi1>
    %57 = vector.broadcast %cst_25 : f32 to vector<32x32xf32>
    %58 = arith.select %56, %57, %54 : vector<32x32xi1>, vector<32x32xf32>
    %c0_26 = arith.constant 0 : index
    %c0_27 = arith.constant 0 : index
    %c0_28 = arith.constant 0 : index
    %59 = vector.load %arg4[%c0_26, %c0_27, %c0_28] : memref<3x32x32xf32, #tpu.memory_space<vmem>>, vector<1x32x32xf32>
    %60 = vector.shape_cast %59 : vector<1x32x32xf32> to vector<32x32xf32>
    %cst_29 = arith.constant dense<0.000000e+00> : vector<32x32xf32>
    %61 = tpu.matmul %53, %60, %cst_29 {dimension_numbers = #tpu.dot_dimension_numbers<[1], [0], [0], [1], [0, 0, 1, 1], [], []>} : vector<32x32xf32>, vector<32x32xf32>, vector<32x32xf32> -> vector<32x32xf32>
    %c1_30 = arith.constant 1 : index
    %c0_31 = arith.constant 0 : index
    %c0_32 = arith.constant 0 : index
    %62 = vector.load %arg4[%c1_30, %c0_31, %c0_32] : memref<3x32x32xf32, #tpu.memory_space<vmem>>, vector<1x32x32xf32>
    %63 = vector.shape_cast %62 : vector<1x32x32xf32> to vector<32x32xf32>
    %cst_33 = arith.constant dense<0.000000e+00> : vector<32x32xf32>
    %64 = tpu.matmul %47, %63, %cst_33 {dimension_numbers = #tpu.dot_dimension_numbers<[1], [0], [0], [1], [0, 0, 1, 1], [], []>} : vector<32x32xf32>, vector<32x32xf32>, vector<32x32xf32> -> vector<32x32xf32>
    %65 = arith.addf %61, %64 : vector<32x32xf32>
    %c2_34 = arith.constant 2 : index
    %c0_35 = arith.constant 0 : index
    %c0_36 = arith.constant 0 : index
    %66 = vector.load %arg4[%c2_34, %c0_35, %c0_36] : memref<3x32x32xf32, #tpu.memory_space<vmem>>, vector<1x32x32xf32>
    %67 = vector.shape_cast %66 : vector<1x32x32xf32> to vector<32x32xf32>
    %cst_37 = arith.constant dense<0.000000e+00> : vector<32x32xf32>
    %68 = tpu.matmul %58, %67, %cst_37 {dimension_numbers = #tpu.dot_dimension_numbers<[1], [0], [0], [1], [0, 0, 1, 1], [], []>} : vector<32x32xf32>, vector<32x32xf32>, vector<32x32xf32> -> vector<32x32xf32>
    %69 = arith.addf %65, %68 : vector<32x32xf32>
    %70 = vector.broadcast %48 : vector<1x32xf32> to vector<32x32xf32>
    %71 = arith.addf %69, %70 : vector<32x32xf32>
    %cst_38 = arith.constant 0.000000e+00 : f32
    %72 = vector.broadcast %cst_38 : f32 to vector<32x32xf32>
    %73 = arith.maximumf %71, %72 : vector<32x32xf32>
    %c0_39 = arith.constant 0 : index
    %c0_40 = arith.constant 0 : index
    %74 = vector.load %arg6[%c0_39, %c0_40] : memref<8x32xf32, #tpu.memory_space<vmem>>, vector<8x32xf32>
    %cst_41 = arith.constant dense<0.000000e+00> : vector<8x32xf32>
    %75 = tpu.matmul %74, %73, %cst_41 {dimension_numbers = #tpu.dot_dimension_numbers<[1], [1], [0], [0], [0, 0, 1, 0], [], []>} : vector<8x32xf32>, vector<32x32xf32>, vector<8x32xf32> -> vector<8x32xf32>
    %c0_42 = arith.constant 0 : index
    %c0_43 = arith.constant 0 : index
    %76 = vector.load %arg7[%c0_42, %c0_43] : memref<8x1xf32, #tpu.memory_space<vmem>>, vector<8x1xf32>
    %77 = vector.broadcast %76 : vector<8x1xf32> to vector<8x32xf32>
    %78 = arith.addf %75, %77 : vector<8x32xf32>
    %79 = arith.negf %78 : vector<8x32xf32>
    %80 = math.exp %79 : vector<8x32xf32>
    %cst_44 = arith.constant 1.000000e+00 : f32
    %81 = vector.broadcast %cst_44 : f32 to vector<8x32xf32>
    %82 = arith.addf %81, %80 : vector<8x32xf32>
    %83 = arith.divf %81, %82 : vector<8x32xf32>
    %c0_45 = arith.constant 0 : index
    %c0_46 = arith.constant 0 : index
    %84 = vector.load %arg8[%c0_45, %c0_46] : memref<8x32xf32, #tpu.memory_space<vmem>>, vector<8x32xf32>
    tpu.vector_store %arg8[%c0_45, %c0_46], %83 {strides = array<i32>} : memref<8x32xf32, #tpu.memory_space<vmem>>, vector<8x32xf32>,
    return
  }
  func.func @transform_0(%arg0: i32) -> (i32, i32) {
    %c0_i32 = arith.constant 0 : i32
    %c0_i32_0 = arith.constant 0 : i32
    return %arg0, %c0_i32 : i32, i32
  }
  func.func @transform_1(%arg0: i32) -> (i32, i32, i32) {
    %c0_i32 = arith.constant 0 : i32
    %c0_i32_0 = arith.constant 0 : i32
    %c0_i32_1 = arith.constant 0 : i32
    %c0_i32_2 = arith.constant 0 : i32
    return %c0_i32, %c0_i32_0, %c0_i32_1 : i32, i32, i32
  }
  func.func @transform_2(%arg0: i32) -> (i32, i32) {
    %c0_i32 = arith.constant 0 : i32
    %c0_i32_0 = arith.constant 0 : i32
    %c0_i32_1 = arith.constant 0 : i32
    return %c0_i32, %c0_i32_0 : i32, i32
  }
  func.func @transform_3(%arg0: i32) -> (i32, i32, i32) {
    %c0_i32 = arith.constant 0 : i32
    %c0_i32_0 = arith.constant 0 : i32
    %c0_i32_1 = arith.constant 0 : i32
    %c0_i32_2 = arith.constant 0 : i32
    return %c0_i32, %c0_i32_0, %c0_i32_1 : i32, i32, i32
  }
  func.func @transform_4(%arg0: i32) -> (i32, i32) {
    %c0_i32 = arith.constant 0 : i32
    %c0_i32_0 = arith.constant 0 : i32
    %c0_i32_1 = arith.constant 0 : i32
    return %c0_i32, %c0_i32_0 : i32, i32
  }
  func.func @transform_5(%arg0: i32) -> (i32, i32) {
    %c0_i32 = arith.constant 0 : i32
    %c0_i32_0 = arith.constant 0 : i32
    %c0_i32_1 = arith.constant 0 : i32
    return %c0_i32, %c0_i32_0 : i32, i32
  }
  func.func @transform_6(%arg0: i32) -> (i32, i32) {
    %c0_i32 = arith.constant 0 : i32
    %c0_i32_0 = arith.constant 0 : i32
    %c0_i32_1 = arith.constant 0 : i32
    return %c0_i32, %c0_i32_0 : i32, i32
  }
  func.func @transform_7(%arg0: i32) -> (i32, i32) {
    %c0_i32 = arith.constant 0 : i32
    %c0_i32_0 = arith.constant 0 : i32
    return %c0_i32, %arg0 : i32, i32
  }
}

</mosaic_0001>

<bundles_post_ra>
// kernel: tem_forward.1
= control target key start
LH: loop header
LB: loop body
LE: loop exit
PB: predicated region body
PF: predicated region fallthrough
CT: control target
= control target key end

     0   :  { %12 = vsyncpa [#allocation3], 0  ;;  %s1118_s24 = smov [#allocation2]   ;;  %s1314_s0 = inlined_call_operand.vmem [shape: f32[32,16], index: 0, kind: input, shape index: {}]   ;;  %s1315_s1 = inlined_call_operand.vmem [shape: f32[3,16,32], index: 1, kind: input, shape index: {}]   ;;  %s1316_s2 = inlined_call_operand.vmem [shape: f32[1,32], index: 2, kind: input, shape index: {}]   ;;  %s1317_s3 = inlined_call_operand.hbm [shape: f32[3,32,32], index: 3, kind: input, shape index: {}]   ;;  %s1318_s4 = inlined_call_operand.vmem [shape: f32[1,32], index: 4, kind: input, shape index: {}]   ;;  %s1319_s5 = inlined_call_operand.vmem [shape: f32[8,32], index: 5, kind: input, shape index: {}]   ;;  %s1320_s6 = inlined_call_operand.vmem [shape: f32[8,1], index: 6, kind: input, shape index: {}]   ;;  %s1321_s7 = inlined_call_operand.vmem [shape: f32[8,32], index: 7, kind: output, shape index: {}]  }
   0x1   :  { %s24_s25 = sshll.u32 %s1118_s24, 4  ;;  %s25_s25 = int_to_ptr.vmem [resolvable:$true] %s24_s25 }
   0x2   :  { %s1104_s26 = scalar_lea.vmem %s25_s25, 1536  ;;  %p1109_p1 = scmp.lt.s32.totalorder %s25_s25, %s25_s25 }
   0x3   :  { %p1105_p0 = scmp.ne.s32.totalorder %s25_s25, %s1104_s26  ;;  %p1110_p2 = scmp.lt.s32.totalorder %s1104_s26, %s1104_s26 }
   0x5   :  { %p1111_p3 = por %p1110_p2, %p1109_p1 }
   0x7   :  { %p1112_p4 = pnand %p1111_p3, %p1105_p0 }
   0x9   :  { %1115 = shalt.err (!%p1112_p4)
}
   0xa   :  { %s1119_s27 = smov 128   ;;  %s1120_s28 = smov 8  }
   0xb   :  { %30 = dma.hbm_to_vmem [thread:$0]  %s1317_s3, 1536, %s25_s25, [#allocation3], %s1119_s27, %s1119_s27, %s1120_s28  }
   0xc   :  { %1116 = dma.done.wait [#allocation3], 1536  }
   0xd   :  { %1117 = vsyncadd [#allocation3], 4294965760  ;;  %v40_v0 = vlaneseq  ;;  %vm153_vm0 = vcmask 130048   ;;  %v920_v5 = vld [vmem:[%s1315_s1 + $0x18] sm:$0xff]  ;;  %v919_v6 = vld [vmem:[%s1315_s1 + $0x10] sm:$0xff]  ;;  %vm500_vm7 = vcmask 261120  }
   0xe   :  { %v101_v7 = vld [vmem:[%s1314_s0] sm:$0xff]  ;;  %1002 = vmatprep.subr.mxu1 %v920_v5  ;;  %v102_v11 = vld [vmem:[%s1314_s0 + $0x8] sm:$0xff]  ;;  %v103_v12 = vld [vmem:[%s1314_s0 + $0x10] sm:$0xff]  ;;  %vm1122_vm8 = vmmov 0  }
   0xf   :  { %v1167_v1 = vshrl.u32 %v40_v0, 7  ;;  %v106_v10 = vrot.slane %v101_v7, 7  ;;  %1006 = vmatprep.mubr.msk.f32.mxu1 %vm153_vm0, %v101_v7  ;;  %1003 = vmatpush3.msra.mxu1 %v920_v5  ;;  %v127_v13 = vrot.slane %v101_v7, 1  ;;  %v149_v14 = vld [vmem:[%s1315_s1 + $0x8] sm:$0xff]  ;;  %v129_v15 = vrot.slane %v103_v12, 1  ;;  %v104_v16 = vld [vmem:[%s1314_s0 + $0x18] sm:$0xff] }
  0x10   :  { %v930_v17 = vld [vmem:[%s1315_s1 + $0x28] sm:$0xff]  ;;  %1004 = vmatprep.subr.mxu1 %v919_v6  ;;  %v109_v18 = vrot.slane %v104_v16, 7  ;;  %v128_v20 = vrot.slane %v102_v11, 1  ;;  %v108_v22 = vrot.slane %v103_v12, 7  ;;  %v130_v23 = vrot.slane %v104_v16, 1  ;;  %v148_v24 = vld [vmem:[%s1315_s1] sm:$0xff] }
  0x11   :  { %v42_v2 = vadd.s32 8, %v1167_v1  ;;  %v49_v3 = vand.u32 15, %v1167_v1  ;;  %v43_v4 = vadd.s32 16, %v1167_v1  ;;  %v44_v9 = vadd.s32 24, %v1167_v1  ;;  %1022 = vmatprep.subr.mxu0 %v930_v17  ;;  %1005 = vmatpush3.msra.mxu1 %v919_v6  ;;  %v929_v25 = vld [vmem:[%s1315_s1 + $0x20] sm:$0xff]  ;;  %v499_v43 = vld [vmem:[#allocation2 + $0x38] sm:$0xff] }
  0x12   :  { %vm110_vm1 = vcmp.lt.s32.totalorder %v1167_v1, 1  ;;  %vm131_vm2 = vcmp.lt.s32.totalorder %v1167_v1, 7  ;;  %1023 = vmatpush3.msra.mxu0 %v930_v17  ;;  %1007 = vmatmul.mubr.msk.f32.vlgmr.msra.gmra.mxu1 %vm153_vm0, %v102_v11  ;;  %v107_v30 = vrot.slane %v102_v11, 7  ;;  %v498_v44 = vld [vmem:[#allocation2 + $0x30] sm:$0xff]  ;;  %v497_v45 = vld [vmem:[#allocation2 + $0x28] sm:$0xff]  ;;  %v496_v46 = vld [vmem:[#allocation2 + $0x20] sm:$0xff] }
  0x13   :  { %v56_v8 = vand.u32 15, %v42_v2  ;;  %vm1200_vm3 = vcmp.eq.s32.totalorder %v49_v3, 0  ;;  %v63_v21 = vand.u32 15, %v43_v4  ;;  %v70_v27 = vand.u32 15, %v44_v9  ;;  %1012 = vmatprep.subr.mxu1 %v149_v14  ;;  %1009 = vmatprep.mubr.msk.f32.mxu1 %vm153_vm0, %v103_v12  ;;  %v494_v47 = vld [vmem:[#allocation2 + $0x18] sm:$0xff]  ;;  %v493_v48 = vld [vmem:[#allocation2 + $0x10] sm:$0xff] }
  0x14   :  { %v114_v28 = vsel %vm110_vm1, %v109_v18, %v106_v10  ;;  %v133_v29 = vsel %vm131_vm2, %v128_v20, %v129_v15  ;;  %1013 = vmatpush3.msra.mxu1 %v149_v14  ;;  %v134_v31 = vsel %vm131_vm2, %v127_v13, %v128_v20  ;;  %1024 = vmatprep.subr.mxu0 %v929_v25  ;;  %v699_v49 = vld [vmem:[#allocation2 + $0x58] sm:$0xff]  ;;  %v492_v50 = vld [vmem:[#allocation2 + $0x8] sm:$0xff]  ;;  %v491_v51 = vld [vmem:[#allocation2] sm:$0xff] }
  0x15   :  { %vm1210_vm4 = vcmp.eq.s32.totalorder %v56_v8, 15  ;;  %1014 = vmatprep.subr.mxu1 %v148_v24  ;;  %v123_v32 = vsel %vm1200_vm3, 0.0, %v114_v28  ;;  %vm1226_vm5 = vcmp.eq.s32.totalorder %v63_v21, 0  ;;  %1025 = vmatpush3.msra.mxu0 %v929_v25  ;;  %v112_v35 = vsel %vm110_vm1, %v107_v30, %v108_v22  ;;  %v935_v61 = vld [vmem:[%s1316_s2] ss:$0 sm:$0xff] }
  0x16   :  { %v145_v33 = vsel %vm1210_vm4, 0.0, %v133_v29  ;;  %1015 = vmatpush3.msra.mxu1 %v148_v24  ;;  %v132_v36 = vsel %vm131_vm2, %v129_v15, %v130_v23  ;;  %vm1234_vm6 = vcmp.eq.s32.totalorder %v70_v27, 15  ;;  %v135_v38 = vsel %vm131_vm2, %v130_v23, %v127_v13  ;;  %1026 = vmatprep.mubr.msk.f32.mxu0 %vm153_vm0, %v134_v31  ;;  %v696_v31 = vld [vmem:[#allocation2 + $0x40] sm:$0xff] }
  0x17   :  { %1010 = vmatmul.mubr.msk.f32.gmra.mxu1 %vm153_vm0, %v104_v16  ;;  %v113_v39 = vsel %vm110_vm1, %v106_v10, %v107_v30  ;;  %1027 = vmatmul.mubr.msk.f32.vlgmr.msra.gmra.mxu0 %vm153_vm0, %v145_v33  ;;  %v125_v40 = vsel %vm1226_vm5, 0.0, %v112_v35  ;;  %v147_v41 = vsel %vm1234_vm6, 0.0, %v135_v38  ;;  %v111_v42 = vsel %vm110_vm1, %v108_v22, %v109_v18  ;;  %v698_v16 = vld [vmem:[#allocation2 + $0x50] sm:$0xff]  ;;  %v697_v22 = vld [vmem:[#allocation2 + $0x48] sm:$0xff] }
  0x18   :  { %1016 = vmatprep.mubr.msk.f32.mxu1 %vm153_vm0, %v123_v32  ;;  %1029 = vmatprep.mubr.msk.f32.mxu0 %vm153_vm0, %v132_v36 }
  0x19   :  { %1032 = vmatprep.subr.mxu1 %v499_v43  ;;  %1046 = vmatprep.subr.mxu0 %v494_v47 }
  0x1a   :  { %1047 = vmatpush3.msra.mxu0 %v494_v47 }
  0x1b   :  { %1017 = vmatmul.mubr.msk.f32.vlgmr.msra.gmra.mxu1 %vm153_vm0, %v113_v39  ;;  %1030 = vmatmul.mubr.msk.f32.gmra.mxu0 %vm153_vm0, %v147_v41 }
  0x1c   :  { %1019 = vmatprep.mubr.msk.f32.mxu1 %vm153_vm0, %v125_v40  ;;  %1033 = vmatpush3.msra.mxu1 %v499_v43  ;;  %v816_v43 = vld [vmem:[%s1320_s6] sm:$0xff] }
  0x1d   :  { %1034 = vmatprep.subr.mxu1 %v498_v44  ;;  %1048 = vmatprep.subr.mxu0 %v493_v48 }
  0x1e   :  { %1035 = vmatpush3.msra.mxu1 %v498_v44  ;;  %1049 = vmatpush3.msra.mxu0 %v493_v48  ;;  %v1123_v44 = vmov 0  }
  0x1f   :  { %1020 = vmatmul.mubr.msk.f32.gmra.mxu1 %vm153_vm0, %v111_v42  ;;  %1036 = vmatprep.subr.mxu1 %v497_v45  ;;  %v1121_v42 = vmov 0.0  }
  0x20   :  { %1037 = vmatpush3.msra.mxu1 %v497_v45  ;;  %1050 = vmatprep.subr.mxu0 %v492_v50 }
  0x21   :  { %1038 = vmatprep.subr.mxu1 %v496_v46  ;;  %1051 = vmatpush3.msra.mxu0 %v492_v50 }
  0x22   :  { %1039 = vmatpush3.msra.mxu1 %v496_v46  ;;  %1052 = vmatprep.subr.mxu0 %v491_v51 }
  0x23   :  { %1060 = vmatprep.subr.mxu1 %v699_v49  ;;  %1053 = vmatpush3.msra.mxu0 %v491_v51 }
  0x24   :  { %1074 = vmatprep.subr.mxu0 %v1121_v42  ;;  %1091 = vset.pattern.permute.xlu0 %v1123_v44 }
  0x25   :  { %819 = vperm.xlu0 %1091, %v816_v43  }
  0xd2   :  { %v1008_v52 = vpop.f32.mrf.mxu1 }
  0xd4   :  { %v232_v53 = vpop.f32.mrf.mxu1 }
  0xd7   :  { %v1011_v54 = vpop.f32.mrf.mxu1  ;;  %v1028_v55 = vpop.f32.mrf.mxu0 }
  0xd9   :  { %v242_v56 = vpop.f32.mrf.mxu1  ;;  %v429_v59 = vpop.f32.mrf.mxu0 }
  0xdb   :  { %v1018_v57 = vpop.f32.mrf.mxu1  ;;  %v1031_v4 = vpop.f32.mrf.mxu0 }
  0xdc   :  { %v335_v58 = vadd.f32 %v1018_v57, %v1008_v52 }
  0xdd   :  { %v329_v60 = vpop.f32.mrf.mxu1  ;;  %v439_v12 = vpop.f32.mrf.mxu0 }
  0xde   :  { %v449_v62 = vadd.f32 %v1028_v55, %v335_v58  ;;  %v330_v63 = vadd.f32 %v329_v60, %v232_v53  ;;  %v948_v58 = vld [vmem:[%s1318_s4] ss:$0 sm:$0xff] }
  0xdf   :  { %v1021_v0 = vpop.f32.mrf.mxu1 }
  0xe0   :  { %v448_v2 = vadd.f32 %v429_v59, %v330_v63  ;;  %v345_v3 = vadd.f32 %v1021_v0, %v1011_v54  ;;  %v459_v5 = vadd.f32 %v935_v61, %v449_v62 }
  0xe1   :  { %v339_v6 = vpop.f32.mrf.mxu1 }
  0xe2   :  { %v458_v7 = vadd.f32 %v935_v61, %v448_v2  ;;  %v451_v8 = vadd.f32 %v1031_v4, %v345_v3  ;;  %v340_v9 = vadd.f32 %v339_v6, %v242_v56  ;;  %v463_v13 = vmax.f32 %v459_v5, 0.0 }
  0xe4   :  { %v462_v10 = vmax.f32 %v458_v7, 0.0  ;;  %v461_v11 = vadd.f32 %v935_v61, %v451_v8  ;;  %v450_v14 = vadd.f32 %v439_v12, %v340_v9  ;;  %v480_v24 = vrot.slane %v463_v13, 1  ;;  %v815_v9 = vld [vmem:[%s1319_s5] sm:$0xff] }
  0xe5   :  { %v468_v27 = vrot.slane %v463_v13, 7 }
  0xe6   :  { %v465_v15 = vmax.f32 %v461_v11, 0.0  ;;  %1040 = vmatprep.mubr.msk.f32.mxu1 %vm500_vm7, %v462_v10  ;;  %v460_v17 = vadd.f32 %v935_v61, %v450_v14  ;;  %v467_v18 = vrot.slane %v462_v10, 7  ;;  %v479_v20 = vrot.slane %v462_v10, 1  ;;  %v820_v10 = vpop.permute.xlu0 %819 }
  0xe7   :  { %1041 = vmatmul.mubr.msk.f32.vlgmr.msra.gmra.mxu1 %vm500_vm7, %v463_v13 }
  0xe8   :  { %v470_v21 = vrot.slane %v465_v15, 7  ;;  %1061 = vmatpush3.msra.mxu1 %v699_v49  ;;  %v464_v23 = vmax.f32 %v460_v17, 0.0  ;;  %v482_v32 = vrot.slane %v465_v15, 1  ;;  %v485_v33 = vsel %vm131_vm2, %v479_v20, %v480_v24 }
  0xe9   :  { %1062 = vmatprep.subr.mxu1 %v698_v16  ;;  %v473_v35 = vsel %vm110_vm1, %v467_v18, %v468_v27 }
  0xea   :  { %1063 = vmatpush3.msra.mxu1 %v698_v16  ;;  %v474_v25 = vsel %vm110_vm1, %v470_v21, %v467_v18  ;;  %v469_v28 = vrot.slane %v464_v23, 7  ;;  %v481_v29 = vrot.slane %v464_v23, 1  ;;  %1043 = vmatprep.mubr.msk.f32.mxu1 %vm500_vm7, %v464_v23  ;;  %v486_v41 = vsel %vm131_vm2, %v482_v32, %v479_v20 }
  0xeb   :  { %1064 = vmatprep.subr.mxu1 %v697_v22  ;;  %v475_v30 = vsel %vm1200_vm3, 0.0, %v474_v25  ;;  %1044 = vmatmul.mubr.msk.f32.gmra.mxu1 %vm500_vm7, %v465_v15  ;;  %v490_v26 = vsel %vm1234_vm6, 0.0, %v486_v41 }
  0xec   :  { %1054 = vmatprep.mubr.msk.f32.mxu0 %vm500_vm7, %v475_v30  ;;  %1065 = vmatpush3.msra.mxu1 %v697_v22  ;;  %v472_v36 = vsel %vm110_vm1, %v468_v27, %v469_v28  ;;  %v484_v19 = vsel %vm131_vm2, %v480_v24, %v481_v29  ;;  %v483_v40 = vsel %vm131_vm2, %v481_v29, %v482_v32 }
  0xed   :  { %1068 = vmatprep.mubr.msk.f32.mxu1 %vm500_vm7, %v485_v33  ;;  %1055 = vmatmul.mubr.msk.f32.vlgmr.msra.gmra.mxu0 %vm500_vm7, %v473_v35  ;;  %v477_v38 = vsel %vm1226_vm5, 0.0, %v472_v36  ;;  %v488_v39 = vsel %vm1210_vm4, 0.0, %v484_v19  ;;  %v471_v34 = vsel %vm110_vm1, %v469_v28, %v470_v21 }
  0xee   :  { %1066 = vmatprep.subr.mxu1 %v696_v31  ;;  %1057 = vmatprep.mubr.msk.f32.mxu0 %vm500_vm7, %v477_v38 }
  0xef   :  { %1067 = vmatpush3.msra.mxu1 %v696_v31 }
  0xf0   :  { %1069 = vmatmul.mubr.msk.f32.vlgmr.msra.gmra.mxu1 %vm500_vm7, %v488_v39 }
  0xf1   :  { %1071 = vmatprep.mubr.msk.f32.mxu1 %vm500_vm7, %v483_v40  ;;  %1058 = vmatmul.mubr.msk.f32.gmra.mxu0 %vm500_vm7, %v471_v34 }
  0xf2   :  { %1082 = vmatprep.mubr.msk.f32.mxu0 %vm1122_vm8, %v1121_v42 }
  0xf4   :  { %1072 = vmatmul.mubr.msk.f32.gmra.mxu1 %vm500_vm7, %v490_v26 }
 0x1a7   :  { %v1042_v1 = vpop.f32.mrf.mxu1 }
 0x1a9   :  { %v579_v45 = vpop.f32.mrf.mxu1 }
 0x1ab   :  { %v1045_v46 = vpop.f32.mrf.mxu1 }
 0x1ad   :  { %v589_v47 = vpop.f32.mrf.mxu1  ;;  %v1056_v48 = vpop.f32.mrf.mxu0 }
 0x1ae   :  { %v682_v55 = vadd.f32 %v1056_v48, %v1042_v1 }
 0x1af   :  { %v676_v37 = vpop.f32.mrf.mxu0 }
 0x1b0   :  { %v1070_v49 = vpop.f32.mrf.mxu1  ;;  %v677_v62 = vadd.f32 %v676_v37, %v579_v45 }
 0x1b1   :  { %v1059_v50 = vpop.f32.mrf.mxu0  ;;  %v798_v63 = vadd.f32 %v1070_v49, %v682_v55 }
 0x1b2   :  { %v778_v51 = vpop.f32.mrf.mxu1  ;;  %v692_v52 = vadd.f32 %v1059_v50, %v1045_v46 }
 0x1b3   :  { %v686_v53 = vpop.f32.mrf.mxu0  ;;  %v808_v3 = vadd.f32 %v948_v58, %v798_v63  ;;  %v797_v4 = vadd.f32 %v778_v51, %v677_v62 }
 0x1b4   :  { %v1073_v54 = vpop.f32.mrf.mxu1  ;;  %v687_v56 = vadd.f32 %v686_v53, %v589_v47 }
 0x1b5   :  { %v800_v57 = vadd.f32 %v1073_v54, %v692_v52  ;;  %v812_v6 = vmax.f32 %v808_v3, 0.0  ;;  %v807_v7 = vadd.f32 %v948_v58, %v797_v4 }
 0x1b6   :  { %v788_v59 = vpop.f32.mrf.mxu1 }
 0x1b7   :  { %v810_v60 = vadd.f32 %v948_v58, %v800_v57  ;;  %v799_v61 = vadd.f32 %v788_v59, %v687_v56  ;;  %v811_v8 = vmax.f32 %v807_v7, 0.0 }
 0x1b9   :  { %v814_v0 = vmax.f32 %v810_v60, 0.0  ;;  %v809_v2 = vadd.f32 %v948_v58, %v799_v61 }
 0x1bb   :  { %1075 = vmatpush3.xpose.msk.msra.mxu0 %vm500_vm7, %v814_v0  ;;  %v813_v5 = vmax.f32 %v809_v2, 0.0 }
 0x1bc   :  { %1076 = vmatprep.subr.mxu0 %v1121_v42 }
 0x1bf   :  { %1077 = vmatpush3.xpose.msk.msra.mxu0 %vm500_vm7, %v813_v5 }
 0x1c0   :  { %1078 = vmatprep.subr.mxu0 %v1121_v42 }
 0x1c3   :  { %1079 = vmatpush3.xpose.msk.msra.mxu0 %vm500_vm7, %v812_v6 }
 0x1c4   :  { %1080 = vmatprep.subr.mxu0 %v1121_v42 }
 0x1c7   :  { %1081 = vmatpush3.xpose.msk.msra.mxu0 %vm500_vm7, %v811_v8 }
 0x1ca   :  { %1083 = vmatmul.mubr.msk.f32.vlgmr.msra.gmra.mxu0 %vm500_vm7, %v815_v9 }
 0x28a   :  { %v903_v11 = vpop.f32.mrf.mxu0 }
 0x28b   :  { %v904_v12 = vadd.f32 %v903_v11, %v820_v10 }
 0x28c   :  { %v1084_v13 = vpop.f32.mrf.mxu0 }
 0x28d   :  { %v954_v14 = vmul.f32 -1.442695, %v904_v12 }
 0x28f   :  { %1092 = vpow2.f32 %v954_v14 }
 0x29c   :  { %v1093_v15 = vpop.eup %1092 }
 0x29d   :  { %v910_v16 = vadd.f32 1.0, %v1093_v15 }
 0x29f   :  { %1094 = vrcp.f32 %v910_v16 }
 0x2ac   :  { %v1095_v17 = vpop.eup %1094 }
 0x2ad   :  { %913 = vst.msk [vmem:[%s1321_s7] sm:$0xff] %vm500_vm7, %v1095_v17 }
 0x2ae   :  { %918 = vsyncpa [#allocation3], 1 }

</bundles_post_ra>
